<compile_context>
chip_gen: v7x
topology: tpu7x:2x2x1
jax: 0.10.0
libtpu: 0.0.40
codegen_flags: <defaults>
</compile_context>

<pallas_src>
import jax
import jax.numpy as jnp
from jax.experimental import pallas as pl
from jax.experimental.pallas import tpu as pltpu


def _self_attn_kernel(x_ref, wproj_ref, bproj_ref, wa_ref, ba_ref, sig_ref,
                      out_ref, theta_sc, phi_sc, g_sc):
    q = pl.program_id(1)
    tq = out_ref.shape[1]          # query tile size
    np_ = phi_sc.shape[0]          # Np = H*W/4 pooled positions
    c8 = phi_sc.shape[1]           # C // 8

    # ---- once per batch: fused theta|phi|g projection (one matmul), 2x2
    # maxpool of the phi/g parts, results kept in bf16 scratch.
    @pl.when(q == 0)
    def _():
        xb = x_ref[0].astype(jnp.bfloat16)                        # (N, C)
        proj = jnp.dot(xb, wproj_ref[...],
                       preferred_element_type=jnp.float32)        # (N, 2*C8+C2)
        proj = proj + bproj_ref[...]                              # bias commutes with max

        theta_sc[...] = proj[:, :c8].astype(jnp.bfloat16)         # (N, C8)

        pg = proj[:, c8:]                                         # (N, C8+C2)
        # rows are window-major: max over the 4 window-pixel row groups == 2x2
        # maxpool over spatial.
        a = jnp.maximum(pg[0 * np_:1 * np_], pg[1 * np_:2 * np_])
        b = jnp.maximum(pg[2 * np_:3 * np_], pg[3 * np_:4 * np_])
        pooled = jnp.maximum(a, b)                                # (Np, C8+C2)
        phi_sc[...] = pooled[:, :c8].astype(jnp.bfloat16)         # (Np, C8)
        g_sc[...] = pooled[:, c8:].astype(jnp.bfloat16)           # (Np, C2)

    # ---- per query tile ----------------------------------------------------
    start = pl.multiple_of(q * tq, tq)
    theta = theta_sc[pl.ds(start, tq), :]                         # (TQ, C8) bf16

    # attn = softmax(theta @ phi^T) over the pooled axis -> (TQ, Np)
    s = jax.lax.dot_general(theta, phi_sc[...], (((1,), (1,)), ((), ())),
                            preferred_element_type=jnp.float32)
    s = s - jnp.max(s, axis=-1, keepdims=True)
    p = jnp.exp(s)                                                # f32
    inv = pl.reciprocal(jnp.sum(p, axis=-1, keepdims=True), approx=True)
    attn = (p * inv).astype(jnp.bfloat16)                         # (TQ, Np)

    # attn_g = attn @ g  -> (TQ, C2)
    attn_g = jnp.dot(attn, g_sc[...], preferred_element_type=jnp.float32)

    # final 1x1 conv (C//2 -> C) + residual with learned sigma (f32)
    y = jnp.dot(attn_g.astype(jnp.bfloat16), wa_ref[...],
                preferred_element_type=jnp.float32) + ba_ref[...]  # (TQ, C)

    x_t = x_ref[0, pl.ds(start, tq), :]                            # (TQ, C) f32
    out_ref[0] = x_t + sig_ref[0, 0] * y


def self_attn_forward(x_nchw, params, tq=None):
    B, C, H, W = x_nchw.shape
    assert H % 2 == 0 and W % 2 == 0, "2x2 maxpool path assumes even H, W"
    assert C % 8 == 0
    N, Np = H * W, (H * W) // 4
    C8, C2 = C // 8, C // 2

    if tq is None:                       # target 256-512 query rows per tile
        tq = N
        for t in (512, 256, 128, 64, 32, 16, 8):
            if N % t == 0:
                tq = t
                break
    assert N % tq == 0
    n_q = N // tq

    # NCHW -> window-major pixel rows: row (k*Np + m) = pixel k of window m.
    x_perm = (jnp.transpose(x_nchw, (0, 2, 3, 1))                 # (B,H,W,C)
              .reshape(B, H // 2, 2, W // 2, 2, C)
              .transpose(0, 2, 4, 1, 3, 5)
              .reshape(B, N, C))

    wt, bt = params["theta"]
    wp, bp = params["phi"]
    wg, bg = params["g"]
    wa, ba = params["attn"]
    sigma = params["sigma"]

    bf = jnp.bfloat16
    # Fused projection weight / bias: columns = [theta | phi | g].
    wproj = jnp.concatenate([wt, wp, wg], axis=1).astype(bf)      # (C, 2*C8+C2)
    bproj = jnp.concatenate([bt, bp, bg], axis=1)                 # (1, 2*C8+C2)
    wa_b = wa.astype(bf)

    flops = 2 * B * (N * C * (2 * C8 + C2)        # fused projections
                     + N * Np * (C8 + C2)         # scores + attn@g
                     + N * C2 * C)                # final 1x1 conv
    cost = pl.CostEstimate(flops=int(flops),
                           transcendentals=int(B * N * Np),
                           bytes_accessed=int(8 * B * N * C))

    out_perm = pl.pallas_call(
        _self_attn_kernel,
        out_shape=jax.ShapeDtypeStruct((B, N, C), jnp.float32),
        grid_spec=pltpu.PrefetchScalarGridSpec(
            num_scalar_prefetch=0,
            grid=(B, n_q),
            in_specs=[
                # full per-batch x block, resident across all q tiles of b
                pl.BlockSpec((1, N, C), lambda b, q: (b, 0, 0)),
                pl.BlockSpec(wproj.shape, lambda b, q: (0, 0)),
                pl.BlockSpec(bproj.shape, lambda b, q: (0, 0)),
                pl.BlockSpec(wa_b.shape, lambda b, q: (0, 0)),
                pl.BlockSpec(ba.shape, lambda b, q: (0, 0)),
                pl.BlockSpec((1, 1), lambda b, q: (0, 0)),
            ],
            out_specs=pl.BlockSpec((1, tq, C), lambda b, q: (b, q, 0)),
            scratch_shapes=[
                pltpu.VMEM((N, C8), jnp.bfloat16),    # theta (all rows)
                pltpu.VMEM((Np, C8), jnp.bfloat16),   # pooled phi
                pltpu.VMEM((Np, C2), jnp.bfloat16),   # pooled g
            ],
        ),
        compiler_params=pltpu.CompilerParams(
            dimension_semantics=("parallel", "arbitrary"),
            vmem_limit_bytes=48 * 1024 * 1024),
        cost_estimate=cost,
    )(x_perm, wproj, bproj, wa_b, ba, sigma)

    # window-major rows -> NHWC -> NCHW
    out = (out_perm.reshape(B, 2, 2, H // 2, W // 2, C)
           .transpose(0, 3, 1, 4, 2, 5)
           .reshape(B, H, W, C)
           .transpose(0, 3, 1, 2))
    return out


# ----------------------------- parameter setup ------------------------------

def _spectral_normalize(w_oi, n_iters=30):
    """Divide (out, in) weight by its largest singular value (power iteration),
    mimicking torch.nn.utils.spectral_norm at forward time."""
    u = jnp.ones((w_oi.shape[0],), jnp.float32)
    u = u / jnp.linalg.norm(u)
    for _ in range(n_iters):
        v = w_oi.T @ u
        v = v / (jnp.linalg.norm(v) + 1e-12)
        u = w_oi @ v
        u = u / (jnp.linalg.norm(u) + 1e-12)
    sigma = u @ (w_oi @ v)
    return w_oi / sigma


def make_params(key, C):
    C8, C2 = C // 8, C // 2
    ks = jax.random.split(key, 8)

    def conv1x1(kw, kb, cin, cout):
        w = jax.random.normal(kw, (cout, cin), jnp.float32) * 0.2
        w = _spectral_normalize(w)
        b = jax.random.normal(kb, (cout,), jnp.float32) * 0.05
        # kernel consumes (cin, cout) weight and (1, cout) bias
        return w.T, b.reshape(1, cout)

    return {
        "theta": conv1x1(ks[0], ks[1], C, C8),
        "phi": conv1x1(ks[2], ks[3], C, C8),
        "g": conv1x1(ks[4], ks[5], C, C2),
        "attn": conv1x1(ks[6], ks[7], C2, C),
        # NOTE: PyTorch initializes sigma to 0 (output == input). Use a nonzero
        # value here so the attention path is actually exercised.
        "sigma": jnp.full((1, 1), 0.5, jnp.float32),
    }


# ----------------------------- plain-JAX reference --------------------------

def self_attn_reference(x, params):
    B, C, H, W = x.shape
    wt, bt = params["theta"]
    wp, bp = params["phi"]
    wg, bg = params["g"]
    wa, ba = params["attn"]
    sigma = params["sigma"][0, 0]

    def conv1x1(z, w_co, b):
        return jnp.einsum('bchw,cd->bdhw', z, w_co) + b.reshape(1, -1, 1, 1)

    def maxpool2(z):
        b_, c_, h_, w_ = z.shape
        return jnp.max(z.reshape(b_, c_, h_ // 2, 2, w_ // 2, 2), axis=(3, 5))

    theta = conv1x1(x, wt, bt).reshape(B, C // 8, H * W)
    phi = maxpool2(conv1x1(x, wp, bp)).reshape(B, C // 8, H * W // 4)
    attn = jax.nn.softmax(jnp.einsum('bcn,bcm->bnm', theta, phi), axis=-1)
    g = maxpool2(conv1x1(x, wg, bg)).reshape(B, C // 2, H * W // 4)
    attn_g = jnp.einsum('bcm,bnm->bcn', g, attn).reshape(B, C // 2, H, W)
    attn_g = conv1x1(attn_g, wa, ba)
    return x + sigma * attn_g


if __name__ == "__main__":
    key = jax.random.PRNGKey(0)
    kx, kp = jax.random.split(key)
    B, C, H, W = 2, 32, 16, 16
    x = jax.random.normal(kx, (B, C, H, W), jnp.float32)
    params = make_params(kp, C)

    # tq=64 -> 4 query tiles per batch, exercising the scratch-reuse (q > 0) path.
    out = jax.block_until_ready(self_attn_forward(x, params, tq=64))
    ref = self_attn_reference(x, params)

    assert out.shape == (B, C, H, W)
    err = float(jnp.max(jnp.abs(out - ref)))
    # bf16 MXU operands + approx reciprocal => relaxed tolerance vs f32 reference.
    assert jnp.allclose(out, ref, atol=5e-2, rtol=5e-2), err
    print("KERNEL_OK")
</pallas_src>

<mosaic_0001>
module attributes {stable_mosaic.version = 11 : i64} {
  func.func @_self_attn_kernel(%arg0: i32, %arg1: i32, %arg2: memref<1x256x32xf32, #tpu.memory_space<vmem>>, %arg3: memref<32x24xbf16, #tpu.memory_space<vmem>>, %arg4: memref<1x24xf32, #tpu.memory_space<vmem>>, %arg5: memref<16x32xbf16, #tpu.memory_space<vmem>>, %arg6: memref<1x32xf32, #tpu.memory_space<vmem>>, %arg7: memref<1x1xf32, #tpu.memory_space<vmem>>, %arg8: memref<1x64x32xf32, #tpu.memory_space<vmem>>, %arg9: memref<256x4xbf16, #tpu.memory_space<vmem>>, %arg10: memref<64x4xbf16, #tpu.memory_space<vmem>>, %arg11: memref<64x16xbf16, #tpu.memory_space<vmem>>) attributes {dimension_semantics = [#tpu.dimension_semantics<parallel>, #tpu.dimension_semantics<arbitrary>], iteration_bounds = array<i64: 2, 4>, scalar_prefetch = 0 : i64, scratch_operands = 3 : i64, tpu.core_type = #tpu.core_type<tc>, window_params = [{transform_indices = @transform_0, window_bounds = array<i64: 1, 256, 32>}, {pipeline_mode = #tpu.pipeline_mode<synchronous>, transform_indices = @transform_1, window_bounds = array<i64: 32, 24>}, {pipeline_mode = #tpu.pipeline_mode<synchronous>, transform_indices = @transform_2, window_bounds = array<i64: 1, 24>}, {pipeline_mode = #tpu.pipeline_mode<synchronous>, transform_indices = @transform_3, window_bounds = array<i64: 16, 32>}, {pipeline_mode = #tpu.pipeline_mode<synchronous>, transform_indices = @transform_4, window_bounds = array<i64: 1, 32>}, {pipeline_mode = #tpu.pipeline_mode<synchronous>, transform_indices = @transform_5, window_bounds = array<i64: 1, 1>}, {transform_indices = @transform_6, window_bounds = array<i64: 1, 64, 32>}]} {
    %c0_i32 = arith.constant 0 : i32
    %0 = arith.cmpi eq, %arg1, %c0_i32 : i32
    %1 = arith.extui %0 : i1 to i32
    %c0_i32_0 = arith.constant 0 : i32
    %2 = arith.cmpi ne, %1, %c0_i32_0 : i32
    scf.if %2 {
      %c0_20 = arith.constant 0 : index
      %c0_21 = arith.constant 0 : index
      %c0_22 = arith.constant 0 : index
      %39 = vector.load %arg2[%c0_20, %c0_21, %c0_22] : memref<1x256x32xf32, #tpu.memory_space<vmem>>, vector<1x256x32xf32>
      %40 = vector.shape_cast %39 : vector<1x256x32xf32> to vector<256x32xf32>
      %41 = arith.truncf %40 : vector<256x32xf32> to vector<256x32xbf16>
      %c0_23 = arith.constant 0 : index
      %c0_24 = arith.constant 0 : index
      %42 = vector.load %arg3[%c0_23, %c0_24] : memref<32x24xbf16, #tpu.memory_space<vmem>>, vector<32x24xbf16>
      %cst_25 = arith.constant dense<0.000000e+00> : vector<256x24xf32>
      %43 = tpu.matmul %41, %42, %cst_25 {dimension_numbers = #tpu.dot_dimension_numbers<[1], [0], [0], [1], [0, 0, 1, 1], [], []>} : vector<256x32xbf16>, vector<32x24xbf16>, vector<256x24xf32> -> vector<256x24xf32>
      %c0_26 = arith.constant 0 : index
      %c0_27 = arith.constant 0 : index
      %44 = vector.load %arg4[%c0_26, %c0_27] : memref<1x24xf32, #tpu.memory_space<vmem>>, vector<1x24xf32>
      %45 = vector.broadcast %44 : vector<1x24xf32> to vector<256x24xf32>
      %46 = arith.addf %43, %45 : vector<256x24xf32>
      %47 = vector.extract_strided_slice %46 {offsets = [0, 0], sizes = [256, 4], strides = [1, 1]} : vector<256x24xf32> to vector<256x4xf32>
      %48 = arith.truncf %47 : vector<256x4xf32> to vector<256x4xbf16>
      %c0_28 = arith.constant 0 : index
      %c0_29 = arith.constant 0 : index
      %49 = vector.load %arg9[%c0_28, %c0_29] : memref<256x4xbf16, #tpu.memory_space<vmem>>, vector<256x4xbf16>
      tpu.vector_store %arg9[%c0_28, %c0_29], %48 {strides = array<i32>} : memref<256x4xbf16, #tpu.memory_space<vmem>>, vector<256x4xbf16>,
      %50 = vector.extract_strided_slice %46 {offsets = [0, 4], sizes = [256, 20], strides = [1, 1]} : vector<256x24xf32> to vector<256x20xf32>
      %51 = vector.extract_strided_slice %50 {offsets = [0, 0], sizes = [64, 20], strides = [1, 1]} : vector<256x20xf32> to vector<64x20xf32>
      %52 = vector.extract_strided_slice %50 {offsets = [64, 0], sizes = [64, 20], strides = [1, 1]} : vector<256x20xf32> to vector<64x20xf32>
      %53 = arith.maximumf %51, %52 : vector<64x20xf32>
      %54 = vector.extract_strided_slice %50 {offsets = [128, 0], sizes = [64, 20], strides = [1, 1]} : vector<256x20xf32> to vector<64x20xf32>
      %55 = vector.extract_strided_slice %50 {offsets = [192, 0], sizes = [64, 20], strides = [1, 1]} : vector<256x20xf32> to vector<64x20xf32>
      %56 = arith.maximumf %54, %55 : vector<64x20xf32>
      %57 = arith.maximumf %53, %56 : vector<64x20xf32>
      %58 = vector.extract_strided_slice %57 {offsets = [0, 0], sizes = [64, 4], strides = [1, 1]} : vector<64x20xf32> to vector<64x4xf32>
      %59 = arith.truncf %58 : vector<64x4xf32> to vector<64x4xbf16>
      %c0_30 = arith.constant 0 : index
      %c0_31 = arith.constant 0 : index
      %60 = vector.load %arg10[%c0_30, %c0_31] : memref<64x4xbf16, #tpu.memory_space<vmem>>, vector<64x4xbf16>
      tpu.vector_store %arg10[%c0_30, %c0_31], %59 {strides = array<i32>} : memref<64x4xbf16, #tpu.memory_space<vmem>>, vector<64x4xbf16>,
      %61 = vector.extract_strided_slice %57 {offsets = [0, 4], sizes = [64, 16], strides = [1, 1]} : vector<64x20xf32> to vector<64x16xf32>
      %62 = arith.truncf %61 : vector<64x16xf32> to vector<64x16xbf16>
      %c0_32 = arith.constant 0 : index
      %c0_33 = arith.constant 0 : index
      %63 = vector.load %arg11[%c0_32, %c0_33] : memref<64x16xbf16, #tpu.memory_space<vmem>>, vector<64x16xbf16>
      tpu.vector_store %arg11[%c0_32, %c0_33], %62 {strides = array<i32>} : memref<64x16xbf16, #tpu.memory_space<vmem>>, vector<64x16xbf16>,
    } else {
    }
    %c64_i32 = arith.constant 64 : i32
    %3 = arith.muli %arg1, %c64_i32 : i32
    %4 = tpu.assume_multiple %3, 64 : i32
    %5 = arith.index_cast %4 : i32 to index
    %c0 = arith.constant 0 : index
    %6 = vector.load %arg9[%5, %c0] : memref<256x4xbf16, #tpu.memory_space<vmem>>, vector<64x4xbf16>
    %c0_1 = arith.constant 0 : index
    %c0_2 = arith.constant 0 : index
    %7 = vector.load %arg10[%c0_1, %c0_2] : memref<64x4xbf16, #tpu.memory_space<vmem>>, vector<64x4xbf16>
    %cst = arith.constant dense<0.000000e+00> : vector<64x64xf32>
    %8 = tpu.matmul %6, %7, %cst {dimension_numbers = #tpu.dot_dimension_numbers<[1], [1], [0], [0], [0, 0, 1, 0], [], []>} : vector<64x4xbf16>, vector<64x4xbf16>, vector<64x64xf32> -> vector<64x64xf32>
    %cst_3 = arith.constant dense<0xFF800000> : vector<64xf32>
    %9 = vector.multi_reduction <maximumf>, %8, %cst_3 [1] : vector<64x64xf32> to vector<64xf32>
    %10 = vector.shape_cast %9 : vector<64xf32> to vector<64x1xf32>
    %11 = vector.broadcast %10 : vector<64x1xf32> to vector<64x64xf32>
    %12 = arith.subf %8, %11 : vector<64x64xf32>
    %13 = math.exp %12 : vector<64x64xf32>
    %cst_4 = arith.constant dense<0.000000e+00> : vector<64xf32>
    %14 = vector.multi_reduction <add>, %13, %cst_4 [1] : vector<64x64xf32> to vector<64xf32>
    %15 = vector.shape_cast %14 : vector<64xf32> to vector<64x1xf32>
    %16 = tpu.reciprocal %15 {approx = true} : vector<64x1xf32> -> vector<64x1xf32>
    %17 = vector.broadcast %16 : vector<64x1xf32> to vector<64x64xf32>
    %18 = arith.mulf %13, %17 : vector<64x64xf32>
    %19 = arith.truncf %18 : vector<64x64xf32> to vector<64x64xbf16>
    %c0_5 = arith.constant 0 : index
    %c0_6 = arith.constant 0 : index
    %20 = vector.load %arg11[%c0_5, %c0_6] : memref<64x16xbf16, #tpu.memory_space<vmem>>, vector<64x16xbf16>
    %cst_7 = arith.constant dense<0.000000e+00> : vector<64x16xf32>
    %21 = tpu.matmul %19, %20, %cst_7 {dimension_numbers = #tpu.dot_dimension_numbers<[1], [0], [0], [1], [0, 0, 1, 1], [], []>} : vector<64x64xbf16>, vector<64x16xbf16>, vector<64x16xf32> -> vector<64x16xf32>
    %22 = arith.truncf %21 : vector<64x16xf32> to vector<64x16xbf16>
    %c0_8 = arith.constant 0 : index
    %c0_9 = arith.constant 0 : index
    %23 = vector.load %arg5[%c0_8, %c0_9] : memref<16x32xbf16, #tpu.memory_space<vmem>>, vector<16x32xbf16>
    %cst_10 = arith.constant dense<0.000000e+00> : vector<64x32xf32>
    %24 = tpu.matmul %22, %23, %cst_10 {dimension_numbers = #tpu.dot_dimension_numbers<[1], [0], [0], [1], [0, 0, 1, 1], [], []>} : vector<64x16xbf16>, vector<16x32xbf16>, vector<64x32xf32> -> vector<64x32xf32>
    %c0_11 = arith.constant 0 : index
    %c0_12 = arith.constant 0 : index
    %25 = vector.load %arg6[%c0_11, %c0_12] : memref<1x32xf32, #tpu.memory_space<vmem>>, vector<1x32xf32>
    %26 = vector.broadcast %25 : vector<1x32xf32> to vector<64x32xf32>
    %27 = arith.addf %24, %26 : vector<64x32xf32>
    %c0_13 = arith.constant 0 : index
    %28 = arith.index_cast %4 : i32 to index
    %c0_14 = arith.constant 0 : index
    %29 = vector.load %arg2[%c0_13, %28, %c0_14] : memref<1x256x32xf32, #tpu.memory_space<vmem>>, vector<1x64x32xf32>
    %30 = vector.shape_cast %29 : vector<1x64x32xf32> to vector<64x32xf32>
    %c0_15 = arith.constant 0 : index
    %c0_16 = arith.constant 0 : index
    %31 = vector.load %arg7[%c0_15, %c0_16] : memref<1x1xf32, #tpu.memory_space<vmem>>, vector<1x1xf32>
    %32 = vector.extract %31[0, 0] : f32 from vector<1x1xf32>
    %33 = vector.broadcast %32 : f32 to vector<64x32xf32>
    %34 = arith.mulf %33, %27 : vector<64x32xf32>
    %35 = arith.addf %30, %34 : vector<64x32xf32>
    %c0_17 = arith.constant 0 : index
    %c0_18 = arith.constant 0 : index
    %c0_19 = arith.constant 0 : index
    %36 = vector.load %arg8[%c0_17, %c0_18, %c0_19] : memref<1x64x32xf32, #tpu.memory_space<vmem>>, vector<1x64x32xf32>
    %37 = vector.shape_cast %36 : vector<1x64x32xf32> to vector<64x32xf32>
    %38 = vector.shape_cast %35 : vector<64x32xf32> to vector<1x64x32xf32>
    tpu.vector_store %arg8[%c0_17, %c0_18, %c0_19], %38 {strides = array<i32>} : memref<1x64x32xf32, #tpu.memory_space<vmem>>, vector<1x64x32xf32>,
    return
  }
  func.func @transform_0(%arg0: i32, %arg1: i32) -> (i32, i32, i32) {
    %c0_i32 = arith.constant 0 : i32
    %c0_i32_0 = arith.constant 0 : i32
    %c0_i32_1 = arith.constant 0 : i32
    return %arg0, %c0_i32, %c0_i32_0 : i32, i32, i32
  }
  func.func @transform_1(%arg0: i32, %arg1: i32) -> (i32, i32) {
    %c0_i32 = arith.constant 0 : i32
    %c0_i32_0 = arith.constant 0 : i32
    %c0_i32_1 = arith.constant 0 : i32
    return %c0_i32, %c0_i32_0 : i32, i32
  }
  func.func @transform_2(%arg0: i32, %arg1: i32) -> (i32, i32) {
    %c0_i32 = arith.constant 0 : i32
    %c0_i32_0 = arith.constant 0 : i32
    %c0_i32_1 = arith.constant 0 : i32
    return %c0_i32, %c0_i32_0 : i32, i32
  }
  func.func @transform_3(%arg0: i32, %arg1: i32) -> (i32, i32) {
    %c0_i32 = arith.constant 0 : i32
    %c0_i32_0 = arith.constant 0 : i32
    %c0_i32_1 = arith.constant 0 : i32
    return %c0_i32, %c0_i32_0 : i32, i32
  }
  func.func @transform_4(%arg0: i32, %arg1: i32) -> (i32, i32) {
    %c0_i32 = arith.constant 0 : i32
    %c0_i32_0 = arith.constant 0 : i32
    %c0_i32_1 = arith.constant 0 : i32
    return %c0_i32, %c0_i32_0 : i32, i32
  }
  func.func @transform_5(%arg0: i32, %arg1: i32) -> (i32, i32) {
    %c0_i32 = arith.constant 0 : i32
    %c0_i32_0 = arith.constant 0 : i32
    %c0_i32_1 = arith.constant 0 : i32
    return %c0_i32, %c0_i32_0 : i32, i32
  }
  func.func @transform_6(%arg0: i32, %arg1: i32) -> (i32, i32, i32) {
    %c0_i32 = arith.constant 0 : i32
    %c0_i32_0 = arith.constant 0 : i32
    return %arg0, %arg1, %c0_i32 : i32, i32, i32
  }
}

</mosaic_0001>

<bundles_post_ra>
// kernel: tpu_custom_call.1
= control target key start
LH: loop header
LB: loop body
LE: loop exit
PB: predicated region body
PF: predicated region fallthrough
CT: control target
= control target key end

     0   :  { %s1493_s23 = smov 0   ;;  %s1495_s24 = smov 0   ;;  %s1801_s0 = inlined_call_operand.vmem [shape: f32[2,256,32], index: 0, kind: input, shape index: {}]   ;;  %s1802_s1 = inlined_call_operand.vmem [shape: bf16[32,24], index: 1, kind: input, shape index: {}]   ;;  %s1803_s2 = inlined_call_operand.vmem [shape: f32[1,24], index: 2, kind: input, shape index: {}]   ;;  %s1804_s3 = inlined_call_operand.vmem [shape: bf16[16,32], index: 3, kind: input, shape index: {}]   ;;  %s1805_s4 = inlined_call_operand.vmem [shape: f32[1,32], index: 4, kind: input, shape index: {}]   ;;  %s1806_s5 = inlined_call_operand.<no memory space> [shape: f32[1,1], index: 5, kind: input, shape index: {}]   ;;  %s1807_s6 = inlined_call_operand.vmem [shape: f32[2,256,32], index: 6, kind: output, shape index: {}]  }
   0x1   :  { %v11_v0 = vstv %s1806_s5  ;;  %s1497_s25 = smov 0   ;;  %s1499_s26 = smov 0  }
   0x2   :  { %12 = vst [vmem:[#allocation5] sm:$0x1] %v11_v0  ;;  %s1501_s27 = smov 0  }
   0x3 LB: > { %s27_s5 = sadd.s32 1, %s1443_s25  ;;  %s30_s28 = sadd.s32 1, %s1447_s26  ;;  %s1451_s27 = sphi %s1501_s27, %s18_s27   ;;  %s1447_s26 = sphi %s1499_s26, %s1811_s26   ;;  %s1443_s25 = sphi %s1497_s25, %s1810_s25   ;;  %s1439_s24 = sphi %s1495_s24, %s1809_s24   ;;  %s1435_s23 = sphi %s1493_s23, %s1808_s23  }
   0x4   : > { %p28_p0 = scmp.ge.s32.totalorder %s27_s5, 4  ;;  %p1164_p1 = scmp.ge.s32.totalorder %s1451_s27, 1 }
   0x5   : > { %p228_p2 = scmp.lt.s32.totalorder %s1451_s27, 9 }
   0x6   : > { %s1813_s5 = smov (%p28_p0, %s27_s5), 0  ;;  %s1815_s28 = smov (!%p28_p0, %s30_s28), %s1447_s26 }
   0x7   : > { %p229_p3 = pnand %p1164_p1, %p228_p2  ;;  %p32_p4 = scmp.ge.s32.totalorder %s1815_s28, 2 }
   0x8   : > { %p262_p5 = scmp.lt.s32.totalorder (!%p229_p3), %s1439_s24, 1  ;;  %s1167_s29 = sshll.u32 (!%p229_p3), %s1435_s23, 3 }
   0x9   : > { %s1817_s28 = smov (%p32_p4, %s1815_s28), 0  ;;  %232 = sbr.rel (%p229_p3) target bundleno = 1415 (0x587), region = 44 }
   0xa   : > { %p270_p6 = scmp.lt.s32.totalorder (!%p229_p3), %s1167_s29, 31  ;;  %p1170_p7 = scmp.ne.s32.totalorder (!%p229_p3), %s1435_s23, 0 }
  0x10   : > { %s1819_s24 = smov (!%p262_p5, %s1439_s24), 1  ;;  %s1821_s29 = smov (!%p270_p6, %s1167_s29), 31 }
  0x11   : > { %s1208_s30 = sshll.u32 %s1819_s24, 8  ;;  %s1168_s7 = sshll.u32 %s1819_s24, 5  ;;  %v1378_v1 = vld [vmem:[%s1802_s1] sm:$0xff] (!%p1170_p7)   ;;  %v1379_v2 = vld [vmem:[%s1802_s1 + $0x8] sm:$0xff] (!%p1170_p7)   ;;  %vm353_vm0 = vcmask (!%p1170_p7), 261120   ;;  %vm579_vm1 = vcmask (!%p1170_p7), 31744  }
  0x12   : > { %s1529_s10 = scalar_lea.vmem %s1801_s0, %s1208_s30  ;;  %s273_s11 = sadd.s32 %s1168_s7, %s1821_s29  ;;  %1248 = vmatprep.subr.bf16.mxu0 (!%p1170_p7), %v1378_v1  ;;  %1326 = vmatprep.subr.bf16.mxu1 (!%p1170_p7), %v1378_v1  ;;  %v1594_v52 = vld [vmem:[%s1803_s2] ss:$0 sm:$0xff] (!%p1170_p7)  ;;  %vm656_vm2 = vcmask (!%p1170_p7), 130048  }
  0x13   : > { %s1169_s12 = sshll.u32 %s273_s11, 3  ;;  %281 = sbr.rel (%p1170_p7) target bundleno = 397 (0x18d), region = 48  ;;  %v282_v3 = vld [vmem:[%s1529_s10] sm:$0xff] (!%p1170_p7)  ;;  %v283_v4 = vld [vmem:[%s1529_s10 + $0x8] sm:$0xff] (!%p1170_p7)  ;;  %1249 = vmatpush3.bf16.msra.mxu0 (!%p1170_p7), %v1378_v1  ;;  %1328 = vmatpush3.bf16.msra.mxu1 (!%p1170_p7), %v1378_v1  ;;  %v284_v8 = vld [vmem:[%s1529_s10 + $0x10] sm:$0xff] (!%p1170_p7) }
  0x14   : > { %s1534_s15 = scalar_lea.vmem %s1807_s6, %s1169_s12  ;;  %v298_v5 = vld [vmem:[%s1529_s10 + $0x80] sm:$0xff] (!%p1170_p7)  ;;  %v314_v6 = vpack.c.bf16 (!%p1170_p7), %v283_v4, %v282_v3  ;;  %v299_v7 = vld [vmem:[%s1529_s10 + $0x88] sm:$0xff] (!%p1170_p7)  ;;  %v285_v9 = vld [vmem:[%s1529_s10 + $0x18] sm:$0xff] (!%p1170_p7)  ;;  %1250 = vmatprep.subr.bf16.mxu0 (!%p1170_p7), %v1379_v2  ;;  %1327 = vmatprep.subr.bf16.mxu1 (!%p1170_p7), %v1379_v2  ;;  %s1453_s22 = smov (!%p1170_p7), 120  }
  0x15   : > { %v322_v10 = vpack.c.bf16 (!%p1170_p7), %v299_v7, %v298_v5  ;;  %v300_v11 = vld [vmem:[%s1529_s10 + $0x90] sm:$0xff] (!%p1170_p7)  ;;  %v301_v12 = vld [vmem:[%s1529_s10 + $0x98] sm:$0xff] (!%p1170_p7)  ;;  %v286_v13 = vld [vmem:[%s1529_s10 + $0x20] sm:$0xff] (!%p1170_p7)  ;;  %v315_v17 = vpack.c.bf16 (!%p1170_p7), %v285_v9, %v284_v8  ;;  %s1454_s24 = smov (!%p1170_p7), 124  }
  0x16   : > { %1252 = vmatprep.mubr.msk.bf16.mxu0 (!%p1170_p7), %vm353_vm0, %v314_v6  ;;  %v287_v14 = vld [vmem:[%s1529_s10 + $0x28] sm:$0xff] (!%p1170_p7)  ;;  %v302_v15 = vld [vmem:[%s1529_s10 + $0xa0] sm:$0xff] (!%p1170_p7)  ;;  %v323_v18 = vpack.c.bf16 (!%p1170_p7), %v301_v12, %v300_v11  ;;  %v288_v21 = vld [vmem:[%s1529_s10 + $0x30] sm:$0xff] (!%p1170_p7) }
  0x17   : > { %v303_v16 = vld [vmem:[%s1529_s10 + $0xa8] sm:$0xff] (!%p1170_p7)  ;;  %1268 = vmatprep.mubr.msk.bf16.mxu1 (!%p1170_p7), %vm353_vm0, %v322_v10  ;;  %1251 = vmatpush3.bf16.msra.mxu0 (!%p1170_p7), %v1379_v2  ;;  %v316_v19 = vpack.c.bf16 (!%p1170_p7), %v287_v14, %v286_v13  ;;  %v289_v22 = vld [vmem:[%s1529_s10 + $0x38] sm:$0xff] (!%p1170_p7)  ;;  %v304_v23 = vld [vmem:[%s1529_s10 + $0xb0] sm:$0xff] (!%p1170_p7) }
  0x18   : > { %1329 = vmatpush3.bf16.msra.mxu1 (!%p1170_p7), %v1379_v2  ;;  %v324_v20 = vpack.c.bf16 (!%p1170_p7), %v303_v16, %v302_v15  ;;  %v305_v24 = vld [vmem:[%s1529_s10 + $0xb8] sm:$0xff] (!%p1170_p7)  ;;  %v290_v25 = vld [vmem:[%s1529_s10 + $0x40] sm:$0xff] (!%p1170_p7)  ;;  %v291_v26 = vld [vmem:[%s1529_s10 + $0x48] sm:$0xff] (!%p1170_p7)  ;;  %v317_v29 = vpack.c.bf16 (!%p1170_p7), %v289_v22, %v288_v21 }
  0x19   : > { %v306_v27 = vld [vmem:[%s1529_s10 + $0xc0] sm:$0xff] (!%p1170_p7)  ;;  %v307_v28 = vld [vmem:[%s1529_s10 + $0xc8] sm:$0xff] (!%p1170_p7)  ;;  %v325_v30 = vpack.c.bf16 (!%p1170_p7), %v305_v24, %v304_v23  ;;  %v318_v31 = vpack.c.bf16 (!%p1170_p7), %v291_v26, %v290_v25  ;;  %v292_v33 = vld [vmem:[%s1529_s10 + $0x50] sm:$0xff] (!%p1170_p7) }
  0x1a   : > { %1253 = vmatmul.mubr.msk.bf16.vlgmr.msra.gmra.mrb[0].mxu0 %vm353_vm0, %v315_v17  ;;  %v326_v32 = vpack.c.bf16 %v307_v28, %v306_v27  ;;  %v293_v34 = vld [vmem:[%s1529_s10 + $0x58] sm:$0xff]  ;;  %v308_v35 = vld [vmem:[%s1529_s10 + $0xd0] sm:$0xff]  ;;  %v294_v37 = vld [vmem:[%s1529_s10 + $0x60] sm:$0xff] }
  0x1b   : > { %1269 = vmatmul.mubr.msk.bf16.vlgmr.msra.gmra.mrb[0].mxu1 %vm353_vm0, %v323_v18  ;;  %1256 = vmatprep.mubr.msk.bf16.mxu0 %vm353_vm0, %v316_v19  ;;  %v309_v36 = vld [vmem:[%s1529_s10 + $0xd8] sm:$0xff]  ;;  %v295_v38 = vld [vmem:[%s1529_s10 + $0x68] sm:$0xff]  ;;  %v310_v39 = vld [vmem:[%s1529_s10 + $0xe0] sm:$0xff]  ;;  %v319_v41 = vpack.c.bf16 %v293_v34, %v292_v33 }
  0x1c   : > { %1272 = vmatprep.mubr.msk.bf16.mxu1 %vm353_vm0, %v324_v20  ;;  %v311_v40 = vld [vmem:[%s1529_s10 + $0xe8] sm:$0xff]  ;;  %v327_v42 = vpack.c.bf16 %v309_v36, %v308_v35  ;;  %v320_v43 = vpack.c.bf16 %v295_v38, %v294_v37  ;;  %v296_v45 = vld [vmem:[%s1529_s10 + $0x70] sm:$0xff]  ;;  %v297_v46 = vld [vmem:[%s1529_s10 + $0x78] sm:$0xff] }
  0x1d   : > { %v328_v44 = vpack.c.bf16 %v311_v40, %v310_v39  ;;  %v312_v47 = vld [vmem:[%s1529_s10 + $0xf0] sm:$0xff]  ;;  %v313_v48 = vld [vmem:[%s1529_s10 + $0xf8] sm:$0xff]  ;;  %v321_v49 = vpack.c.bf16 %v297_v46, %v296_v45 }
  0x1e   : > { %v329_v50 = vpack.c.bf16 %v313_v48, %v312_v47 }
  0x22   : > { %1257 = vmatmul.mubr.msk.bf16.gmra.mrb[4].mxu0 %vm353_vm0, %v317_v29 }
  0x23   : > { %1273 = vmatmul.mubr.msk.bf16.gmra.mrb[4].mxu1 %vm353_vm0, %v325_v30  ;;  %1260 = vmatprep.mubr.msk.bf16.mxu0 %vm353_vm0, %v318_v31 }
  0x24   : > { %1276 = vmatprep.mubr.msk.bf16.mxu1 %vm353_vm0, %v326_v32 }
  0x2a   : > { %1261 = vmatmul.mubr.msk.bf16.gmra.mrb[8].mxu0 %vm353_vm0, %v319_v41 }
  0x2b   : > { %1277 = vmatmul.mubr.msk.bf16.gmra.mrb[8].mxu1 %vm353_vm0, %v327_v42  ;;  %1264 = vmatprep.mubr.msk.bf16.mxu0 %vm353_vm0, %v320_v43 }
  0x2c   : > { %1280 = vmatprep.mubr.msk.bf16.mxu1 %vm353_vm0, %v328_v44 }
  0x32   : > { %1265 = vmatmul.mubr.msk.bf16.gmra.mrb[12].mxu0 %vm353_vm0, %v321_v49 }
  0x33   : > { %1281 = vmatmul.mubr.msk.bf16.gmra.mrb[12].mxu1 %vm353_vm0, %v329_v50 }
  0xed   : > { %v1254_v51 = vpop.f32.mrb[0].mxu0 }
  0xee   : > { %v1270_v53 = vpop.f32.mrb[0].mxu1  ;;  %v436_v54 = vpop.f32.mrb[1].mxu0  ;;  %v1597_v58 = vadd.f32 %v1254_v51, %v1594_v52 }
  0xef   : > { %v500_v55 = vpop.f32.mrb[1].mxu1  ;;  %v1255_v56 = vpop.f32.mrb[2].mxu0  ;;  %v1600_v59 = vadd.f32 %v1270_v53, %v1594_v52  ;;  %v437_v0 = vadd.f32 %v1594_v52, %v436_v54 }
  0xf0   : > { %v1271_v57 = vpop.f32.mrb[2].mxu1  ;;  %v1603_v60 = vadd.f32 %v1255_v56, %v1594_v52  ;;  %v439_v62 = vpop.f32.mrb[3].mxu0  ;;  %v501_v1 = vadd.f32 %v1594_v52, %v500_v55 }
  0xf1   : > { %v1606_v61 = vadd.f32 %v1271_v57, %v1594_v52  ;;  %v503_v63 = vpop.f32.mrb[3].mxu1  ;;  %v1611_v2 = vadd.f32 %v1594_v52, %v439_v62 }
  0xf2   : > { %v1614_v3 = vadd.f32 %v1594_v52, %v503_v63  ;;  %v564_v4 = vpack.c.bf16 %v1603_v60, %v1597_v58 }
  0xf3   : > { %v572_v5 = vpack.c.bf16 %v1606_v61, %v1600_v59  ;;  %v563_v6 = vpack.c.bf16 %v1611_v2, %v437_v0 }
  0xf4   : > { %v571_v7 = vpack.c.bf16 %v1614_v3, %v501_v1  ;;  %581 = vst.msk [vmem:[#allocation2 + $0x8] sm:$0xff] %vm579_vm1, %v564_v4 }
  0xf5   : > { %589 = vst.msk [vmem:[#allocation2 + $0x48] sm:$0xff] %vm579_vm1, %v572_v5  ;;  %580 = vst.msk [vmem:[#allocation2] sm:$0xff] %vm579_vm1, %v563_v6  ;;  %v1258_v8 = vpop.f32.mrb[4].mxu0 }
  0xf6   : > { %588 = vst.msk [vmem:[#allocation2 + $0x40] sm:$0xff] %vm579_vm1, %v571_v7  ;;  %v1274_v9 = vpop.f32.mrb[4].mxu1  ;;  %v452_v10 = vpop.f32.mrb[5].mxu0  ;;  %v1627_v14 = vadd.f32 %v1258_v8, %v1594_v52 }
  0xf7   : > { %v516_v11 = vpop.f32.mrb[5].mxu1  ;;  %v1259_v12 = vpop.f32.mrb[6].mxu0  ;;  %v1630_v15 = vadd.f32 %v1274_v9, %v1594_v52  ;;  %v1639_v20 = vadd.f32 %v1594_v52, %v452_v10 }
  0xf8   : > { %v1275_v13 = vpop.f32.mrb[6].mxu1  ;;  %v1633_v16 = vadd.f32 %v1259_v12, %v1594_v52  ;;  %v455_v18 = vpop.f32.mrb[7].mxu0  ;;  %v1642_v21 = vadd.f32 %v1594_v52, %v516_v11 }
  0xf9   : > { %v1636_v17 = vadd.f32 %v1275_v13, %v1594_v52  ;;  %v519_v19 = vpop.f32.mrb[7].mxu1  ;;  %v1645_v22 = vadd.f32 %v1594_v52, %v455_v18 }
  0xfa   : > { %v1648_v23 = vadd.f32 %v1594_v52, %v519_v19  ;;  %v566_v24 = vpack.c.bf16 %v1633_v16, %v1627_v14 }
  0xfb   : > { %v574_v25 = vpack.c.bf16 %v1636_v17, %v1630_v15  ;;  %v565_v26 = vpack.c.bf16 %v1645_v22, %v1639_v20 }
  0xfc   : > { %v573_v27 = vpack.c.bf16 %v1648_v23, %v1642_v21  ;;  %583 = vst.msk [vmem:[#allocation2 + $0x18] sm:$0xff] %vm579_vm1, %v566_v24 }
  0xfd   : > { %591 = vst.msk [vmem:[#allocation2 + $0x58] sm:$0xff] %vm579_vm1, %v574_v25  ;;  %582 = vst.msk [vmem:[#allocation2 + $0x10] sm:$0xff] %vm579_vm1, %v565_v26  ;;  %v1262_v28 = vpop.f32.mrb[8].mxu0 }
  0xfe   : > { %590 = vst.msk [vmem:[#allocation2 + $0x50] sm:$0xff] %vm579_vm1, %v573_v27  ;;  %v1278_v29 = vpop.f32.mrb[8].mxu1  ;;  %v477_v30 = vadd.f32 %v1262_v28, %v1594_v52  ;;  %v468_v32 = vpop.f32.mrb[9].mxu0 }
  0xff   : > { %v541_v31 = vadd.f32 %v1278_v29, %v1594_v52  ;;  %v532_v33 = vpop.f32.mrb[9].mxu1  ;;  %v469_v34 = vadd.f32 %v1594_v52, %v468_v32  ;;  %v1263_v36 = vpop.f32.mrb[10].mxu0 }
 0x100   : > { %v533_v35 = vadd.f32 %v1594_v52, %v532_v33  ;;  %v1279_v37 = vpop.f32.mrb[10].mxu1  ;;  %v598_v38 = vmax.f32 %v1597_v58, %v477_v30  ;;  %v480_v40 = vadd.f32 %v1263_v36, %v1594_v52  ;;  %v471_v42 = vpop.f32.mrb[11].mxu0 }
 0x101   : > { %v606_v39 = vmax.f32 %v1600_v59, %v541_v31  ;;  %v544_v41 = vadd.f32 %v1279_v37, %v1594_v52  ;;  %v535_v43 = vpop.f32.mrb[11].mxu1  ;;  %v596_v44 = vmax.f32 %v437_v0, %v469_v34  ;;  %v472_v46 = vadd.f32 %v1594_v52, %v471_v42 }
 0x102   : > { %v604_v45 = vmax.f32 %v501_v1, %v533_v35  ;;  %v536_v47 = vadd.f32 %v1594_v52, %v535_v43  ;;  %v568_v48 = vpack.c.bf16 %v480_v40, %v477_v30  ;;  %v599_v49 = vmax.f32 %v1603_v60, %v480_v40 }
 0x103   : > { %v576_v50 = vpack.c.bf16 %v544_v41, %v541_v31  ;;  %v607_v51 = vmax.f32 %v1606_v61, %v544_v41  ;;  %v567_v54 = vpack.c.bf16 %v472_v46, %v469_v34  ;;  %v597_v55 = vmax.f32 %v1611_v2, %v472_v46 }
 0x104   : > { %v612_v53 = vmax.f32 %v596_v44, %v604_v45  ;;  %v575_v56 = vpack.c.bf16 %v536_v47, %v533_v35  ;;  %585 = vst.msk [vmem:[#allocation2 + $0x28] sm:$0xff] %vm579_vm1, %v568_v48  ;;  %v605_v57 = vmax.f32 %v1614_v3, %v536_v47  ;;  %v614_v58 = vmax.f32 %v598_v38, %v606_v39 }
 0x105   : > { %593 = vst.msk [vmem:[#allocation2 + $0x68] sm:$0xff] %vm579_vm1, %v576_v50  ;;  %v615_v59 = vmax.f32 %v599_v49, %v607_v51  ;;  %584 = vst.msk [vmem:[#allocation2 + $0x20] sm:$0xff] %vm579_vm1, %v567_v54  ;;  %v1266_v60 = vpop.f32.mrb[12].mxu0 }
 0x106   : > { %592 = vst.msk [vmem:[#allocation2 + $0x60] sm:$0xff] %vm579_vm1, %v575_v56  ;;  %v1282_v62 = vpop.f32.mrb[12].mxu1  ;;  %v613_v61 = vmax.f32 %v597_v55, %v605_v57  ;;  %v493_v63 = vadd.f32 %v1266_v60, %v1594_v52  ;;  %v484_v1 = vpop.f32.mrb[13].mxu0 }
 0x107   : > { %v557_v0 = vadd.f32 %v1282_v62, %v1594_v52  ;;  %v548_v2 = vpop.f32.mrb[13].mxu1  ;;  %v621_v4 = vpack.c.bf16 %v615_v59, %v614_v58  ;;  %v485_v5 = vadd.f32 %v1594_v52, %v484_v1  ;;  %v1267_v6 = vpop.f32.mrb[14].mxu0 }
 0x108   : > { %v549_v3 = vadd.f32 %v1594_v52, %v548_v2  ;;  %v1283_v7 = vpop.f32.mrb[14].mxu1  ;;  %v602_v8 = vmax.f32 %v1627_v14, %v493_v63  ;;  %v496_v10 = vadd.f32 %v1267_v6, %v1594_v52  ;;  %v487_v13 = vpop.f32.mrb[15].mxu0  ;;  %v620_v32 = vpack.c.bf16 %v613_v61, %v612_v53 }
 0x109   : > { %v610_v9 = vmax.f32 %v1630_v15, %v557_v0  ;;  %v560_v11 = vadd.f32 %v1283_v7, %v1594_v52  ;;  %v551_v12 = vpop.f32.mrb[15].mxu1  ;;  %646 = vrot.lane.b32.xlu1 %v621_v4, %s1453_s22  ;;  %v600_v18 = vmax.f32 %v1639_v20, %v485_v5  ;;  %630 = vrot.lane.b32.xlu0 %v621_v4, %s1454_s24 }
 0x10a   : > { %v608_v19 = vmax.f32 %v1642_v21, %v549_v3  ;;  %v552_v24 = vadd.f32 %v1594_v52, %v551_v12  ;;  %v488_v14 = vadd.f32 %v1594_v52, %v487_v13  ;;  %v570_v25 = vpack.c.bf16 %v496_v10, %v493_v63 }
 0x10b   : > { %v618_v15 = vmax.f32 %v602_v8, %v610_v9  ;;  %v603_v26 = vmax.f32 %v1633_v16, %v496_v10  ;;  %v578_v27 = vpack.c.bf16 %v560_v11, %v557_v0  ;;  %v611_v29 = vmax.f32 %v1636_v17, %v560_v11 }
 0x10c   : > { %v616_v28 = vmax.f32 %v600_v18, %v608_v19  ;;  %v577_v30 = vpack.c.bf16 %v552_v24, %v549_v3  ;;  %v609_v31 = vmax.f32 %v1648_v23, %v552_v24  ;;  %587 = vst.msk [vmem:[#allocation2 + $0x38] sm:$0xff] %vm579_vm1, %v570_v25  ;;  %v569_v20 = vpack.c.bf16 %v488_v14, %v485_v5 }
 0x10d   : > { %595 = vst.msk [vmem:[#allocation2 + $0x78] sm:$0xff] %vm579_vm1, %v578_v27  ;;  %v601_v21 = vmax.f32 %v1645_v22, %v488_v14  ;;  %v619_v52 = vmax.f32 %v603_v26, %v611_v29  ;;  %628 = vrot.lane.b32.xlu0 %v620_v32, %s1454_s24 }
 0x10e   : > { %594 = vst.msk [vmem:[#allocation2 + $0x70] sm:$0xff] %vm579_vm1, %v577_v30  ;;  %586 = vst.msk [vmem:[#allocation2 + $0x30] sm:$0xff] %vm579_vm1, %v569_v20 }
 0x10f   : > { %v617_v16 = vmax.f32 %v601_v21, %v609_v31  ;;  %v623_v33 = vpack.c.bf16 %v619_v52, %v618_v15 }
 0x111   : > { %v622_v17 = vpack.c.bf16 %v617_v16, %v616_v28  ;;  %634 = vrot.lane.b32.xlu1 %v623_v33, %s1454_s24  ;;  %644 = vrot.lane.b32.xlu0 %v620_v32, %s1453_s22 }
 0x115   : > { %632 = vrot.lane.b32.xlu1 %v622_v17, %s1454_s24  ;;  %648 = vrot.lane.b32.xlu0 %v622_v17, %s1453_s22 }
 0x119   : > { %650 = vrot.lane.b32.xlu1 %v623_v33, %s1453_s22 }
 0x17b   : > { %v647_v22 = vpop.permute.xlu1 %646  ;;  %v631_v23 = vpop.permute.xlu0 %630 }
 0x17c   : > { %658 = vst.msk [vmem:[#allocation4 + $0x8] sm:$0xff] %vm656_vm2, %v647_v22 }
 0x17d   : > { %641 = vst.msk [vmem:[#allocation3 + $0x8] sm:$0xff] %vm579_vm1, %v631_v23 }
 0x17f   : > { %v629_v34 = vpop.permute.xlu0 %628 }
 0x180   : > { %640 = vst.msk [vmem:[#allocation3] sm:$0xff] %vm579_vm1, %v629_v34 }
 0x183   : > { %v635_v35 = vpop.permute.xlu1 %634  ;;  %v645_v36 = vpop.permute.xlu0 %644 }
 0x184   : > { %643 = vst.msk [vmem:[#allocation3 + $0x18] sm:$0xff] %vm579_vm1, %v635_v35 }
 0x185   : > { %657 = vst.msk [vmem:[#allocation4] sm:$0xff] %vm656_vm2, %v645_v36 }
 0x187   : > { %v633_v37 = vpop.permute.xlu1 %632  ;;  %v649_v38 = vpop.permute.xlu0 %648 }
 0x188   : > { %642 = vst.msk [vmem:[#allocation3 + $0x10] sm:$0xff] %vm579_vm1, %v633_v37 }
 0x189   : > { %659 = vst.msk [vmem:[#allocation4 + $0x10] sm:$0xff] %vm656_vm2, %v649_v38 }
 0x18b   : > { %v651_v39 = vpop.permute.xlu1 %650 }
 0x18c   : > { %660 = vst.msk [vmem:[#allocation4 + $0x18] sm:$0xff] %vm656_vm2, %v651_v39 }
 0x18d PF: > { %v670_v40 = vld [vmem:[#allocation3] sm:$0xff]  ;;  %vm674_vm3 = vcmask 31744   ;;  %v671_v41 = vld [vmem:[#allocation3 + $0x8] sm:$0xff]  ;;  %s1190_s29 = sshll.u32 %s1435_s23, 6  ;;  %v673_v47 = vld [vmem:[#allocation3 + $0x18] sm:$0xff]  ;;  %vm764_vm4 = vcmask 523264  }
 0x18e   : > { %1330 = vmatprep.subr.msk.bf16.mxu0 %vm674_vm3, %v670_v40  ;;  %v688_v42 = vsel %vm674_vm3, %v670_v40, 0  ;;  %s662_s30 = sshra.s32 %s1190_s29, 4  ;;  %v691_v44 = vsel %vm674_vm3, %v671_v41, 0  ;;  %v697_v48 = vsel %vm674_vm3, %v673_v47, 0  ;;  %vm957_vm5 = vcmask 130048   ;;  %s1760_s16 = scalar_lea.vmem %s1529_s10, %s1190_s29 }
 0x18f   : > { %1285 = vmatpush3.bf16.xpose.msra.mxu0 %v688_v42  ;;  %s1191_s7 = sshll.u32 %s662_s30, 3  ;;  %v672_v45 = vld [vmem:[#allocation3 + $0x10] sm:$0xff]  ;;  %vm1063_vm6 = vcmask 261120  }
 0x190   : > { %1331 = vmatprep.subr.msk.bf16.mxu0 %vm674_vm3, %v671_v41  ;;  %s665_s8 = scalar_lea.vmem [#allocation2], %s1191_s7  ;;  %v694_v46 = vsel %vm674_vm3, %v672_v45, 0 }
 0x191   : > { %v666_v43 = vld [vmem:[%s665_s8] sm:$0xff]  ;;  %v667_v49 = vld [vmem:[%s665_s8 + $0x8] sm:$0xff]  ;;  %v668_v50 = vld [vmem:[%s665_s8 + $0x10] sm:$0xff] }
 0x192   : > { %1292 = vmatprep.mubr.msk.bf16.mxu0 %vm674_vm3, %v666_v43  ;;  %v669_v51 = vld [vmem:[%s665_s8 + $0x18] sm:$0xff] }
 0x197   : > { %1287 = vmatpush3.bf16.xpose.msra.mxu0 %v691_v44  ;;  %v857_v44 = vld [vmem:[#allocation4] sm:$0xff] }
 0x198   : > { %1332 = vmatprep.subr.msk.bf16.mxu0 %vm674_vm3, %v672_v45  ;;  %1300 = vmatprep.subr.bf16.mxu1 %v857_v44  ;;  %v858_v45 = vld [vmem:[#allocation4 + $0x8] sm:$0xff] }
 0x199   : > { %1301 = vmatpush3.bf16.msra.mxu1 %v857_v44 }
 0x19a   : > { %1302 = vmatprep.subr.bf16.mxu1 %v858_v45 }
 0x19d   : > { %1303 = vmatpush3.bf16.msra.mxu1 %v858_v45 }
 0x19f   : > { %1289 = vmatpush3.bf16.xpose.msra.mxu0 %v694_v46  ;;  %v859_v46 = vld [vmem:[#allocation4 + $0x10] sm:$0xff] }
 0x1a0   : > { %1333 = vmatprep.subr.msk.bf16.mxu0 %vm674_vm3, %v673_v47  ;;  %1304 = vmatprep.subr.bf16.mxu1 %v859_v46  ;;  %v860_v47 = vld [vmem:[#allocation4 + $0x18] sm:$0xff] }
 0x1a1   : > { %1305 = vmatpush3.bf16.msra.mxu1 %v859_v46 }
 0x1a2   : > { %1306 = vmatprep.subr.bf16.mxu1 %v860_v47 }
 0x1a5   : > { %1307 = vmatpush3.bf16.msra.mxu1 %v860_v47 }
 0x1a7   : > { %1291 = vmatpush3.bf16.xpose.msra.mxu0 %v697_v48  ;;  %v1380_v48 = vld [vmem:[%s1804_s3] sm:$0xff]  }
 0x1a8   : > { %1316 = vmatprep.subr.bf16.mxu1 %v1380_v48 }
 0x1ae   : > { %1293 = vmatmul.mubr.msk.bf16.vlgmr.msra.gmra.mrb[0].mxu0 %vm674_vm3, %v667_v49 }
 0x1af   : > { %1296 = vmatprep.mubr.msk.bf16.mxu0 %vm674_vm3, %v668_v50 }
 0x1b6   : > { %1297 = vmatmul.mubr.msk.bf16.gmra.mrb[4].mxu0 %vm674_vm3, %v669_v51 }
 0x281   : > { %v1294_v53 = vpop.f32.mrb[0].mxu0 }
 0x282   : > { %v733_v54 = vpop.f32.mrb[1].mxu0  ;;  %v771_v55 = vsel %vm764_vm4, %v1294_v53, -inf }
 0x283   : > { %772 = vmax.xlane.f32.xlu1 %v771_v55  ;;  %v1295_v56 = vpop.f32.mrb[2].mxu0  ;;  %v765_v57 = vsel %vm764_vm4, %v733_v54, -inf }
 0x284   : > { %766 = vmax.xlane.f32.xlu0 %v765_v57  ;;  %v736_v58 = vpop.f32.mrb[3].mxu0  ;;  %v774_v59 = vsel %vm764_vm4, %v1295_v56, -inf }
 0x285   : > { %v768_v60 = vsel %vm764_vm4, %v736_v58, -inf }
 0x287   : > { %775 = vmax.xlane.f32.xlu1 %v774_v59 }
 0x288   : > { %769 = vmax.xlane.f32.xlu0 %v768_v60 }
 0x289   : > { %v1298_v62 = vpop.f32.mrb[4].mxu0 }
 0x28a   : > { %v749_v61 = vpop.f32.mrb[5].mxu0  ;;  %v783_v4 = vsel %vm764_vm4, %v1298_v62, -inf }
 0x28b   : > { %v1299_v63 = vpop.f32.mrb[6].mxu0  ;;  %v777_v0 = vsel %vm764_vm4, %v749_v61, -inf }
 0x28c   : > { %778 = vmax.xlane.f32.xlu0 %v777_v0  ;;  %v752_v1 = vpop.f32.mrb[7].mxu0  ;;  %v786_v5 = vsel %vm764_vm4, %v1299_v63, -inf }
 0x28d   : > { %v780_v2 = vsel %vm764_vm4, %v752_v1, -inf }
 0x28e   : > { %781 = vmax.xlane.f32.xlu1 %v780_v2 }
 0x290   : > { %784 = vmax.xlane.f32.xlu0 %v783_v4 }
 0x292   : > { %787 = vmax.xlane.f32.xlu1 %v786_v5 }
 0x310   : > { %v773_v3 = vpop.xlane.xlu1 %772 }
 0x311   : > { %v791_v6 = vsub.f32 %v1294_v53, %v773_v3  ;;  %v767_v7 = vpop.xlane.xlu0 %766 }
 0x312   : > { %v789_v8 = vsub.f32 %v733_v54, %v767_v7 }
 0x313   : > { %v801_v9 = vmul.f32 1.442695, %v791_v6 }
 0x314   : > { %v797_v10 = vmul.f32 1.442695, %v789_v8  ;;  %v776_v11 = vpop.xlane.xlu1 %775 }
 0x315   : > { %v792_v12 = vsub.f32 %v1295_v56, %v776_v11  ;;  %v770_v13 = vpop.xlane.xlu0 %769 }
 0x316   : > { %1381 = vpow2.f32 %v797_v10  ;;  %v790_v18 = vsub.f32 %v736_v58, %v770_v13 }
 0x317   : > { %1383 = vpow2.f32 %v801_v9  ;;  %v803_v19 = vmul.f32 1.442695, %v792_v12 }
 0x318   : > { %v799_v24 = vmul.f32 1.442695, %v790_v18  ;;  %v1044_v18 = vld [vmem:[#allocation5] sm:$0x1] }
 0x319   : > { %v779_v14 = vpop.xlane.xlu0 %778  ;;  %1334 = vpush %v1044_v18 }
 0x31a   : > { %1385 = vpow2.f32 %v799_v24  ;;  %v793_v15 = vsub.f32 %v749_v61, %v779_v14 }
 0x31b   : > { %v782_v25 = vpop.xlane.xlu1 %781  ;;  %1387 = vpow2.f32 %v803_v19 }
 0x31c   : > { %v805_v26 = vmul.f32 1.442695, %v793_v15  ;;  %v794_v27 = vsub.f32 %v752_v1, %v782_v25 }
 0x31d   : > { %v785_v28 = vpop.xlane.xlu0 %784 }
 0x31e   : > { %1389 = vpow2.f32 %v805_v26  ;;  %v807_v29 = vmul.f32 1.442695, %v794_v27  ;;  %v795_v30 = vsub.f32 %v1298_v62, %v785_v28 }
 0x31f   : > { %v788_v31 = vpop.xlane.xlu1 %787 }
 0x320   : > { %v1382_v20 = vpop.eup %1381  ;;  %1391 = vpow2.f32 %v807_v29  ;;  %v809_v21 = vmul.f32 1.442695, %v795_v30  ;;  %v796_v32 = vsub.f32 %v1299_v63, %v788_v31 }
 0x321   : > { %v813_v52 = vsel %vm764_vm4, %v1382_v20, 0.0  ;;  %v1736_v16 = vpop.eup %1383 }
 0x322   : > { %1393 = vpow2.f32 %v809_v21  ;;  %v811_v33 = vmul.f32 1.442695, %v796_v32  ;;  %814 = vadd.xlane.f32.xlu0 %v813_v52  ;;  %v819_v22 = vsel %vm764_vm4, %v1736_v16, 0.0  ;;  %v1200_v21 = vld [vmem:[%s1805_s4] ss:$0 sm:$0xff] }
 0x324   : > { %v1386_v17 = vpop.eup %1385  ;;  %1395 = vpow2.f32 %v811_v33 }
 0x325   : > { %v816_v23 = vsel %vm764_vm4, %v1386_v17, 0.0  ;;  %v1388_v34 = vpop.eup %1387 }
 0x326   : > { %820 = vadd.xlane.f32.xlu0 %v819_v22  ;;  %817 = vadd.xlane.f32.xlu1 %v816_v23  ;;  %v822_v37 = vsel %vm764_vm4, %v1388_v34, 0.0  ;;  %v1038_v22 = vld [vmem:[%s1760_s16 + $0x10] sm:$0xff] }
 0x328   : > { %v1390_v35 = vpop.eup %1389 }
 0x329   : > { %v825_v36 = vsel %vm764_vm4, %v1390_v35, 0.0 }
 0x32a   : > { %v1392_v38 = vpop.eup %1391  ;;  %826 = vadd.xlane.f32.xlu0 %v825_v36  ;;  %823 = vadd.xlane.f32.xlu1 %v822_v37 }
 0x32b   : > { %v828_v41 = vsel %vm764_vm4, %v1392_v38, 0.0 }
 0x32c   : > { %v1394_v39 = vpop.eup %1393 }
 0x32d   : > { %v831_v40 = vsel %vm764_vm4, %v1394_v39, 0.0 }
 0x32e   : > { %v1396_v42 = vpop.eup %1395  ;;  %832 = vadd.xlane.f32.xlu0 %v831_v40  ;;  %829 = vadd.xlane.f32.xlu1 %v828_v41 }
 0x32f   : > { %v834_v43 = vsel %vm764_vm4, %v1396_v42, 0.0 }
 0x332   : > { %835 = vadd.xlane.f32.xlu1 %v834_v43  ;;  %v1037_v43 = vld [vmem:[%s1760_s16 + $0x8] sm:$0xff] }
 0x34a   : > { %s1335_s12 = spop %1334 }
 0x34b   : > { %v1046_v52 = vstv %s1335_s12 }
 0x3af   : > { %v815_v49 = vpop.xlane.xlu0 %814 }
 0x3b0   : > { %1397 = vrcp.f32 %v815_v49 }
 0x3b3   : > { %v821_v50 = vpop.xlane.xlu0 %820  ;;  %v818_v51 = vpop.xlane.xlu1 %817 }
 0x3b4   : > { %1399 = vrcp.f32 %v818_v51  ;;  %v1042_v51 = vld [vmem:[%s1760_s16 + $0x30] sm:$0xff] }
 0x3b5   : > { %1401 = vrcp.f32 %v821_v50 }
 0x3b7   : > { %v827_v53 = vpop.xlane.xlu0 %826  ;;  %v824_v54 = vpop.xlane.xlu1 %823 }
 0x3b8   : > { %1403 = vrcp.f32 %v824_v54 }
 0x3b9   : > { %1405 = vrcp.f32 %v827_v53 }
 0x3ba   : > { %v1398_v57 = vpop.eup %1397 }
 0x3bb   : > { %v833_v55 = vpop.xlane.xlu0 %832  ;;  %v830_v56 = vpop.xlane.xlu1 %829  ;;  %v845_v60 = vmul.f32 %v1398_v57, %v1382_v20 }
 0x3bc   : > { %1407 = vrcp.f32 %v830_v56  ;;  %v1040_v56 = vld [vmem:[%s1760_s16 + $0x20] sm:$0xff] }
 0x3bd   : > { %1409 = vrcp.f32 %v833_v55 }
 0x3be   : > { %v1400_v58 = vpop.eup %1399 }
 0x3bf   : > { %v836_v59 = vpop.xlane.xlu1 %835  ;;  %v846_v62 = vmul.f32 %v1400_v58, %v1386_v17  ;;  %v1402_v61 = vpop.eup %1401 }
 0x3c0   : > { %1411 = vrcp.f32 %v836_v59  ;;  %v847_v1 = vmul.f32 %v1402_v61, %v1736_v16 }
 0x3c1   : > { %v853_v63 = vpack.c.bf16 %v846_v62, %v845_v60  ;;  %v1043_v60 = vld [vmem:[%s1760_s16 + $0x38] sm:$0xff] }
 0x3c2   : > { %v1404_v0 = vpop.eup %1403 }
 0x3c3   : > { %1308 = vmatprep.mubr.msk.bf16.mxu1 %vm764_vm4, %v853_v63  ;;  %v848_v2 = vmul.f32 %v1404_v0, %v1388_v34  ;;  %v1406_v4 = vpop.eup %1405  ;;  %v1036_v34 = vld [vmem:[%s1760_s16] sm:$0xff]  ;;  %v1041_v0 = vld [vmem:[%s1760_s16 + $0x28] sm:$0xff] }
 0x3c4   : > { %v849_v7 = vmul.f32 %v1406_v4, %v1390_v35 }
 0x3c5   : > { %v854_v5 = vpack.c.bf16 %v848_v2, %v847_v1 }
 0x3c6   : > { %v1408_v3 = vpop.eup %1407 }
 0x3c7   : > { %v1410_v6 = vpop.eup %1409  ;;  %1309 = vmatmul.mubr.msk.bf16.vlgmr.msra.gmra.mrb[0].mxu1 %vm764_vm4, %v854_v5  ;;  %v850_v8 = vmul.f32 %v1408_v3, %v1392_v38 }
 0x3c8   : > { %1317 = vmatpush3.bf16.msra.mxu1 %v1380_v48  ;;  %v851_v11 = vmul.f32 %v1410_v6, %v1394_v39  ;;  %v1039_v39 = vld [vmem:[%s1760_s16 + $0x18] sm:$0xff] }
 0x3c9   : > { %v855_v10 = vpack.c.bf16 %v850_v8, %v849_v7 }
 0x3ca   : > { %v1412_v9 = vpop.eup %1411 }
 0x3cb   : > { %v852_v12 = vmul.f32 %v1412_v9, %v1396_v42  ;;  %1312 = vmatprep.mubr.msk.bf16.mxu1 %vm764_vm4, %v855_v10 }
 0x3cd   : > { %v856_v13 = vpack.c.bf16 %v852_v12, %v851_v11 }
 0x3cf   : > { %1313 = vmatmul.mubr.msk.bf16.gmra.mrb[4].mxu1 %vm764_vm4, %v856_v13 }
 0x49a   : > { %v1310_v19 = vpop.f32.mrb[0].mxu1 }
 0x49b   : > { %v907_v24 = vpop.f32.mrb[1].mxu1 }
 0x49c   : > { %v1311_v14 = vpop.f32.mrb[2].mxu1 }
 0x49d   : > { %v939_v15 = vpack.c.bf16 %v1311_v14, %v1310_v19  ;;  %v910_v25 = vpop.f32.mrb[3].mxu1 }
 0x49e   : > { %v938_v26 = vpack.c.bf16 %v910_v25, %v907_v24 }
 0x4a0   : > { %1318 = vmatprep.mubr.msk.bf16.mxu1 %vm957_vm5, %v938_v26 }
 0x4a1   : > { %1319 = vmatmul.mubr.msk.bf16.vlgmr.msra.gmra.mrb[8].mxu1 %vm957_vm5, %v939_v15 }
 0x4a2   : > { %v1314_v27 = vpop.f32.mrb[4].mxu1 }
 0x4a3   : > { %v923_v28 = vpop.f32.mrb[5].mxu1 }
 0x4a4   : > { %v1315_v29 = vpop.f32.mrb[6].mxu1 }
 0x4a5   : > { %v941_v30 = vpack.c.bf16 %v1315_v29, %v1314_v27  ;;  %v926_v31 = vpop.f32.mrb[7].mxu1 }
 0x4a6   : > { %v940_v20 = vpack.c.bf16 %v926_v31, %v923_v28 }
 0x4a8   : > { %1322 = vmatprep.mubr.msk.bf16.mxu1 %vm957_vm5, %v940_v20 }
 0x4a9   : > { %1323 = vmatmul.mubr.msk.bf16.gmra.mrb[12].mxu1 %vm957_vm5, %v941_v30 }
 0x574   : > { %v1320_v32 = vpop.f32.mrb[8].mxu1 }
 0x575   : > { %v1013_v16 = vadd.f32 %v1320_v32, %v1200_v21  ;;  %v1004_v33 = vpop.f32.mrb[9].mxu1 }
 0x576   : > { %v1005_v17 = vadd.f32 %v1200_v21, %v1004_v33  ;;  %v1321_v23 = vpop.f32.mrb[10].mxu1 }
 0x577   : > { %v1049_v35 = vmul.f32 %v1046_v52, %v1013_v16  ;;  %v1016_v36 = vadd.f32 %v1321_v23, %v1200_v21  ;;  %v1007_v37 = vpop.f32.mrb[11].mxu1 }
 0x578   : > { %v1047_v38 = vmul.f32 %v1046_v52, %v1005_v17  ;;  %v1008_v40 = vadd.f32 %v1200_v21, %v1007_v37 }
 0x579   : > { %v1057_v41 = vadd.f32 %v1049_v35, %v1038_v22  ;;  %v1050_v42 = vmul.f32 %v1046_v52, %v1016_v36 }
 0x57a   : > { %v1055_v44 = vadd.f32 %v1047_v38, %v1036_v34  ;;  %v1048_v45 = vmul.f32 %v1046_v52, %v1008_v40 }
 0x57b   : > { %1066 = vst.msk [vmem:[%s1534_s15 + $0x10] sm:$0xff] %vm1063_vm6, %v1057_v41  ;;  %v1058_v46 = vadd.f32 %v1050_v42, %v1039_v39 }
 0x57c   : > { %1064 = vst.msk [vmem:[%s1534_s15] sm:$0xff] %vm1063_vm6, %v1055_v44  ;;  %v1056_v47 = vadd.f32 %v1048_v45, %v1037_v43  ;;  %v1324_v48 = vpop.f32.mrb[12].mxu1 }
 0x57d   : > { %1067 = vst.msk [vmem:[%s1534_s15 + $0x18] sm:$0xff] %vm1063_vm6, %v1058_v46  ;;  %v1029_v49 = vadd.f32 %v1324_v48, %v1200_v21  ;;  %v1020_v50 = vpop.f32.mrb[13].mxu1 }
 0x57e   : > { %1065 = vst.msk [vmem:[%s1534_s15 + $0x8] sm:$0xff] %vm1063_vm6, %v1056_v47  ;;  %v1021_v53 = vadd.f32 %v1200_v21, %v1020_v50  ;;  %v1325_v54 = vpop.f32.mrb[14].mxu1 }
 0x57f   : > { %v1053_v55 = vmul.f32 %v1046_v52, %v1029_v49  ;;  %v1032_v57 = vadd.f32 %v1325_v54, %v1200_v21  ;;  %v1023_v58 = vpop.f32.mrb[15].mxu1 }
 0x580   : > { %v1051_v59 = vmul.f32 %v1046_v52, %v1021_v53  ;;  %v1024_v62 = vadd.f32 %v1200_v21, %v1023_v58 }
 0x581   : > { %v1061_v61 = vadd.f32 %v1053_v55, %v1042_v51  ;;  %v1054_v63 = vmul.f32 %v1046_v52, %v1032_v57 }
 0x582   : > { %v1059_v1 = vadd.f32 %v1051_v59, %v1040_v56  ;;  %v1052_v2 = vmul.f32 %v1046_v52, %v1024_v62 }
 0x583   : > { %1070 = vst.msk [vmem:[%s1534_s15 + $0x30] sm:$0xff] %vm1063_vm6, %v1061_v61  ;;  %v1062_v4 = vadd.f32 %v1054_v63, %v1043_v60 }
 0x584   : > { %1068 = vst.msk [vmem:[%s1534_s15 + $0x20] sm:$0xff] %vm1063_vm6, %v1059_v1  ;;  %v1060_v5 = vadd.f32 %v1052_v2, %v1041_v0 }
 0x585   : > { %1071 = vst.msk [vmem:[%s1534_s15 + $0x38] sm:$0xff] %vm1063_vm6, %v1062_v4 }
 0x586   : > { %1069 = vst.msk [vmem:[%s1534_s15 + $0x28] sm:$0xff] %vm1063_vm6, %v1060_v5 }
 0x587 PF: > { %s18_s27 = sadd.s32 1, %s1451_s27   ;;  %s1808_s23 = smov %s1443_s25 }
 0x588   : > { %p15_p8 = scmp.ge.s32.totalorder %s18_s27, 10   ;;  %s1809_s24 = smov %s1447_s26 }
 0x589   : > { %s1810_s25 = smov %s1813_s5  ;;  %s1811_s26 = smov %s1817_s28 }
 0x58a   :  { %17 = sbr.rel (!%p15_p8) target bundleno = 3 (0x3), region = 80 }

</bundles_post_ra>
